<compile_context>
chip_gen: v7x
topology: tpu7x:2x2x1
jax: 0.10.0
libtpu: 0.0.40
codegen_flags: <defaults>
</compile_context>

<pallas_src>
import math

import jax
import jax.numpy as jnp
from jax import lax
from jax.experimental import pallas as pl
from jax.experimental.pallas import tpu as pltpu

_A = math.sqrt(2.0 / math.pi)   # sqrt(2/pi)
_B = _A * 0.044715              # folded cubic coefficient


def _round_up(a, b):
    return ((a + b - 1) // b) * b


def _activation_dtype():
    """bf16 activations on chips with a bf16 VPU/EUP (v6e/v7x); f32 otherwise."""
    try:
        kind = jax.devices()[0].device_kind.lower()
    except Exception:
        return jnp.float32
    if any(tag in kind for tag in ("v2", "v3", "v4", "v5")):
        return jnp.float32   # no bf16 VPU/EUP on v5e and older
    return jnp.bfloat16


def mlp_kernel(x_ref, w1_ref, b1_ref, w2_ref, b2_ref, o_ref):
    act_dtype = b1_ref.dtype

    # c_fc on the MXU: cast the f32 x tile to bf16 right before the dot; the
    # cast hides under the DMA/MXU pipeline.  Accumulate in f32.
    h = jnp.dot(x_ref[...].astype(w1_ref.dtype), w1_ref[...],
                preferred_element_type=jnp.float32)

    # Bias + tanh-GELU in the activation dtype (bf16 on v6e/v7x, f32 on v5e).
    # The GELU's 0.5 is folded into w2 in the wrapper, so:
    #   u = h * (A + B*h^2),   g = h * (1 + tanh(u))
    h = h.astype(act_dtype) + b1_ref[...]
    h2 = h * h
    u = h * (_A + _B * h2)
    g = h * (1.0 + jnp.tanh(u))                      # (T, H), VPU/EUP

    # c_proj on the (idle) MXU: contract H, landing directly in the lane-dense
    # (1, tile_rows) output layout.  w2_ref already holds 0.5 * W2^T.
    y = lax.dot_general(
        w2_ref[...], g,
        dimension_numbers=(((1,), (1,)), ((), ())),
        preferred_element_type=jnp.float32)          # (1, T) f32
    o_ref[...] = (y + b2_ref[...]).astype(o_ref.dtype)
    # TODO(synk): nn.Dropout is identity in eval mode; training-mode dropout
    # would use pltpu.prng_seed + pltpu.stateful_bernoulli here.


def mlp_forward(x, w1, b1, w2, b2, *, tile_rows=512):
    """x: (B, S, F) f32.  w1: (F, H), b1: (H,), w2: (H, 1), b2: (1,).

    Returns (B, S, 1) f32 (PyTorch MLP semantics, eval mode).
    """
    B, S, F = x.shape
    H = w1.shape[1]
    N = B * S

    act_dtype = _activation_dtype()

    # Row tile: multiple of 128, large enough to amortize per-grid-step
    # overhead, but small enough that large-N problems get >= 2 grid steps so
    # the "parallel" row axis can shard across v7x's two TensorCores.
    tile_rows = max(128, _round_up(int(tile_rows), 128))
    if N > 128:
        tile_rows = min(tile_rows, max(128, _round_up(pl.cdiv(N, 2), 128)))
    else:
        tile_rows = 128
    grid = (pl.cdiv(N, tile_rows),)

    # No wrapper-side pad / full-x cast pass: x stays f32, the ragged last row
    # block is handled by Pallas, and the bf16 cast happens in-kernel.
    x2d = x.reshape(N, F)
    w1m = w1.astype(jnp.bfloat16)                       # small, VMEM-resident
    b1r = b1.reshape(1, H).astype(act_dtype)
    w2r = (0.5 * w2.reshape(1, H)).astype(act_dtype)    # GELU's 0.5 folded in
    b2r = b2.reshape(1, 1).astype(jnp.float32)

    # Rough VMEM working set (double-buffered operands + activation
    # intermediates) with headroom; v7x has only 64 MiB VMEM per TensorCore.
    act_bytes = jnp.dtype(act_dtype).itemsize
    vmem_est = (2 * tile_rows * F * 4        # x tiles (f32, double-buffered)
                + 2 * F * H * 2              # W1 (bf16)
                + 4 * H * act_bytes          # b1 + w2 rows
                + 2 * tile_rows * 4          # output slabs
                + 4 * tile_rows * H * act_bytes)  # h/g intermediates
    vmem_limit = int(min(max(2 * vmem_est, 32 * 1024 * 1024), 96 * 1024 * 1024))

    out_row = pl.pallas_call(
        mlp_kernel,
        out_shape=jax.ShapeDtypeStruct((1, N), jnp.float32),
        grid_spec=pltpu.PrefetchScalarGridSpec(
            num_scalar_prefetch=0,
            grid=grid,
            in_specs=[
                pl.BlockSpec((tile_rows, F), lambda i: (i, 0)),  # x row tile (f32)
                pl.BlockSpec((F, H), lambda i: (0, 0)),          # W1 (bf16, resident)
                pl.BlockSpec((1, H), lambda i: (0, 0)),          # b1 (act dtype)
                pl.BlockSpec((1, H), lambda i: (0, 0)),          # 0.5*W2 row (act dtype)
                pl.BlockSpec((1, 1), lambda i: (0, 0)),          # b2 (f32)
            ],
            out_specs=pl.BlockSpec((1, tile_rows), lambda i: (0, i)),  # lane-dense
        ),
        compiler_params=pltpu.CompilerParams(
            dimension_semantics=("parallel",),
            vmem_limit_bytes=vmem_limit,
        ),
    )(x2d, w1m, b1r, w2r, b2r)

    return out_row[0, :N].reshape(B, S, 1)


def mlp_reference(x, w1, b1, w2, b2):
    h = jnp.einsum("bsf,fh->bsh", x, w1, precision="highest") + b1
    g = 0.5 * h * (1.0 + jnp.tanh(_A * (h + 0.044715 * h * h * h)))
    return jnp.einsum("bsh,ho->bso", g, w2, precision="highest") + b2


if __name__ == "__main__":
    # Small shapes consistent with the module: feature_size=128, hidden=4*128.
    B, S, F = 2, 8, 128
    H = 4 * F

    key = jax.random.PRNGKey(0)
    kx, kw1, kb1, kw2, kb2 = jax.random.split(key, 5)

    # Parameter init mimicking nn.Linear's uniform(-1/sqrt(in), 1/sqrt(in)).
    lim1 = 1.0 / math.sqrt(F)
    lim2 = 1.0 / math.sqrt(H)
    w1 = jax.random.uniform(kw1, (F, H), jnp.float32, -lim1, lim1)
    b1 = jax.random.uniform(kb1, (H,), jnp.float32, -lim1, lim1)
    w2 = jax.random.uniform(kw2, (H, 1), jnp.float32, -lim2, lim2)
    b2 = jax.random.uniform(kb2, (1,), jnp.float32, -lim2, lim2)

    x = jax.random.normal(kx, (B, S, F), jnp.float32)

    out = mlp_forward(x, w1, b1, w2, b2)
    jax.block_until_ready(out)

    ref = mlp_reference(x, w1, b1, w2, b2)
    assert out.shape == (B, S, 1), out.shape
    # bf16 MXU inputs (+ bf16 activations on v6e/v7x) vs the pure-f32 reference.
    assert jnp.allclose(out, ref, atol=2e-2, rtol=2e-2), (
        "mismatch vs reference: max abs diff = %s" % jnp.max(jnp.abs(out - ref)))

    print("KERNEL_OK")
</pallas_src>

<mosaic_0001>
module attributes {stable_mosaic.version = 11 : i64} {
  func.func @mlp_kernel(%arg0: i32, %arg1: memref<128x128xf32, #tpu.memory_space<vmem>>, %arg2: memref<128x512xbf16, #tpu.memory_space<vmem>>, %arg3: memref<1x512xbf16, #tpu.memory_space<vmem>>, %arg4: memref<1x512xbf16, #tpu.memory_space<vmem>>, %arg5: memref<1x1xf32, #tpu.memory_space<vmem>>, %arg6: memref<1x128xf32, #tpu.memory_space<vmem>>) attributes {dimension_semantics = [#tpu.dimension_semantics<parallel>], iteration_bounds = array<i64: 1>, scalar_prefetch = 0 : i64, scratch_operands = 0 : i64, tpu.core_type = #tpu.core_type<tc>, window_params = [{transform_indices = @transform_0, window_bounds = array<i64: 128, 128>}, {pipeline_mode = #tpu.pipeline_mode<synchronous>, transform_indices = @transform_1, window_bounds = array<i64: 128, 512>}, {pipeline_mode = #tpu.pipeline_mode<synchronous>, transform_indices = @transform_2, window_bounds = array<i64: 1, 512>}, {pipeline_mode = #tpu.pipeline_mode<synchronous>, transform_indices = @transform_3, window_bounds = array<i64: 1, 512>}, {pipeline_mode = #tpu.pipeline_mode<synchronous>, transform_indices = @transform_4, window_bounds = array<i64: 1, 1>}, {transform_indices = @transform_5, window_bounds = array<i64: 1, 128>}]} {
    %c0 = arith.constant 0 : index
    %c0_0 = arith.constant 0 : index
    %0 = vector.load %arg1[%c0, %c0_0] : memref<128x128xf32, #tpu.memory_space<vmem>>, vector<128x128xf32>
    %1 = arith.truncf %0 : vector<128x128xf32> to vector<128x128xbf16>
    %c0_1 = arith.constant 0 : index
    %c0_2 = arith.constant 0 : index
    %2 = vector.load %arg2[%c0_1, %c0_2] : memref<128x512xbf16, #tpu.memory_space<vmem>>, vector<128x512xbf16>
    %cst = arith.constant dense<0.000000e+00> : vector<128x512xf32>
    %3 = tpu.matmul %1, %2, %cst {dimension_numbers = #tpu.dot_dimension_numbers<[1], [0], [0], [1], [0, 0, 1, 1], [], []>} : vector<128x128xbf16>, vector<128x512xbf16>, vector<128x512xf32> -> vector<128x512xf32>
    %4 = arith.truncf %3 : vector<128x512xf32> to vector<128x512xbf16>
    %c0_3 = arith.constant 0 : index
    %c0_4 = arith.constant 0 : index
    %5 = vector.load %arg3[%c0_3, %c0_4] : memref<1x512xbf16, #tpu.memory_space<vmem>>, vector<1x512xbf16>
    %6 = vector.broadcast %5 : vector<1x512xbf16> to vector<128x512xbf16>
    %7 = arith.addf %4, %6 : vector<128x512xbf16>
    %8 = arith.mulf %7, %7 : vector<128x512xbf16>
    %cst_5 = arith.constant 3.564450e-02 : bf16
    %9 = vector.broadcast %cst_5 : bf16 to vector<128x512xbf16>
    %10 = arith.mulf %9, %8 : vector<128x512xbf16>
    %cst_6 = arith.constant 7.968750e-01 : bf16
    %11 = vector.broadcast %cst_6 : bf16 to vector<128x512xbf16>
    %12 = arith.addf %11, %10 : vector<128x512xbf16>
    %13 = arith.mulf %7, %12 : vector<128x512xbf16>
    %14 = math.tanh %13 : vector<128x512xbf16>
    %cst_7 = arith.constant 1.000000e+00 : bf16
    %15 = vector.broadcast %cst_7 : bf16 to vector<128x512xbf16>
    %16 = arith.addf %15, %14 : vector<128x512xbf16>
    %17 = arith.mulf %7, %16 : vector<128x512xbf16>
    %c0_8 = arith.constant 0 : index
    %c0_9 = arith.constant 0 : index
    %18 = vector.load %arg4[%c0_8, %c0_9] : memref<1x512xbf16, #tpu.memory_space<vmem>>, vector<1x512xbf16>
    %cst_10 = arith.constant dense<0.000000e+00> : vector<1x128xf32>
    %19 = tpu.matmul %18, %17, %cst_10 {dimension_numbers = #tpu.dot_dimension_numbers<[1], [1], [0], [0], [0, 0, 1, 0], [], []>} : vector<1x512xbf16>, vector<128x512xbf16>, vector<1x128xf32> -> vector<1x128xf32>
    %c0_11 = arith.constant 0 : index
    %c0_12 = arith.constant 0 : index
    %20 = vector.load %arg5[%c0_11, %c0_12] : memref<1x1xf32, #tpu.memory_space<vmem>>, vector<1x1xf32>
    %21 = vector.broadcast %20 : vector<1x1xf32> to vector<1x128xf32>
    %22 = arith.addf %19, %21 : vector<1x128xf32>
    %c0_13 = arith.constant 0 : index
    %c0_14 = arith.constant 0 : index
    %23 = vector.load %arg6[%c0_13, %c0_14] : memref<1x128xf32, #tpu.memory_space<vmem>>, vector<1x128xf32>
    tpu.vector_store %arg6[%c0_13, %c0_14], %22 {strides = array<i32>} : memref<1x128xf32, #tpu.memory_space<vmem>>, vector<1x128xf32>,
    return
  }
  func.func @transform_0(%arg0: i32) -> (i32, i32) {
    %c0_i32 = arith.constant 0 : i32
    %c0_i32_0 = arith.constant 0 : i32
    return %arg0, %c0_i32 : i32, i32
  }
  func.func @transform_1(%arg0: i32) -> (i32, i32) {
    %c0_i32 = arith.constant 0 : i32
    %c0_i32_0 = arith.constant 0 : i32
    %c0_i32_1 = arith.constant 0 : i32
    return %c0_i32, %c0_i32_0 : i32, i32
  }
  func.func @transform_2(%arg0: i32) -> (i32, i32) {
    %c0_i32 = arith.constant 0 : i32
    %c0_i32_0 = arith.constant 0 : i32
    %c0_i32_1 = arith.constant 0 : i32
    return %c0_i32, %c0_i32_0 : i32, i32
  }
  func.func @transform_3(%arg0: i32) -> (i32, i32) {
    %c0_i32 = arith.constant 0 : i32
    %c0_i32_0 = arith.constant 0 : i32
    %c0_i32_1 = arith.constant 0 : i32
    return %c0_i32, %c0_i32_0 : i32, i32
  }
  func.func @transform_4(%arg0: i32) -> (i32, i32) {
    %c0_i32 = arith.constant 0 : i32
    %c0_i32_0 = arith.constant 0 : i32
    %c0_i32_1 = arith.constant 0 : i32
    return %c0_i32, %c0_i32_0 : i32, i32
  }
  func.func @transform_5(%arg0: i32) -> (i32, i32) {
    %c0_i32 = arith.constant 0 : i32
    %c0_i32_0 = arith.constant 0 : i32
    return %c0_i32, %arg0 : i32, i32
  }
}

</mosaic_0001>

<bundles_post_ra>
// kernel: tpu_custom_call.1
= control target key start
LH: loop header
LB: loop body
LE: loop exit
PB: predicated region body
PF: predicated region fallthrough
CT: control target
= control target key end

     0   :  { %s1560_s0 = inlined_call_operand.hbm [shape: f32[16,128], index: 0, kind: input, shape index: {}]   ;;  %s1561_s1 = inlined_call_operand.hbm [shape: bf16[128,512], index: 1, kind: input, shape index: {}]   ;;  %s1562_s2 = inlined_call_operand.vmem [shape: bf16[1,512], index: 2, kind: input, shape index: {}]   ;;  %s1563_s3 = inlined_call_operand.vmem [shape: bf16[1,512], index: 3, kind: input, shape index: {}]   ;;  %s1564_s4 = inlined_call_operand.<no memory space> [shape: f32[1,1], index: 4, kind: input, shape index: {}]   ;;  %s1565_s5 = inlined_call_operand.hbm [shape: f32[1,16], index: 5, kind: output, shape index: {}]  }
   0x1   :  { %v10_v0 = vstv %s1564_s4 }
   0x2   :  { %11 = vst [vmem:[#allocation2] sm:$0x1] %v10_v0 }
   0x3   :  { %12 = vsyncpa [#allocation4], 0 }
   0x4   :  { %13 = vsyncpa [#allocation7], 0 }
   0x5   :  { %14 = vsyncpa [#allocation5], 0 }
   0x6   :  { %19 = vsyncadd [#allocation4], 1792  ;;  %s1206_s20 = smov [#allocation3]   ;;  %s1134_s24 = scalar_lea.hbm %s1560_s0, 256 }
   0x7   :  { %s20_s21 = sshll.u32 %s1206_s20, 4  ;;  %p1135_p0 = scmp.ne.s32.totalorder %s1560_s0, %s1134_s24  ;;  %s21_s21 = int_to_ptr.vmem [resolvable:$true] %s20_s21 }
   0x8   :  { %p1138_p1 = scmp.lt.u32.totalorder %s1134_s24, %s1560_s0 }
   0xa   :  { %p1140_p2 = pnand %p1138_p1, %p1135_p0 }
   0xc   :  { %1143 = shalt.err (!%p1140_p2)
}
   0xd   :  { %s1144_s4 = scalar_lea.vmem %s21_s21, 256  ;;  %s1148_s29 = scalar_lea.vmem %s21_s21, 2048 }
   0xe   :  { %p1145_p3 = scmp.ne.s32.totalorder %s21_s21, %s1144_s4  ;;  %p1149_p4 = scmp.lt.s32.totalorder %s21_s21, %s21_s21 }
   0xf   :  { %p1150_p5 = scmp.lt.s32.totalorder %s1148_s29, %s1144_s4 }
  0x11   :  { %p1151_p6 = por %p1150_p5, %p1149_p4 }
  0x13   :  { %p1152_p7 = pnand %p1151_p6, %p1145_p3 }
  0x15   :  { %1155 = shalt.err (!%p1152_p7)
}
  0x16   :  { %s1207_s30 = smov 128   ;;  %s1208_s6 = smov 8  }
  0x17   :  { %26 = dma.hbm_to_vmem [thread:$0]  %s1560_s0, 256, %s21_s21, [#allocation4], %s1207_s30, %s1207_s30, %s1208_s6  }
  0x18   :  { %s1209_s9 = smov [#allocation6]   ;;  %s1156_s13 = scalar_lea.hbm %s1561_s1, 4096 }
  0x19   :  { %s32_s10 = sshll.u32 %s1209_s9, 4  ;;  %p1157_p8 = scmp.ne.s32.totalorder %s1561_s1, %s1156_s13  ;;  %s33_s10 = int_to_ptr.vmem [resolvable:$true] %s32_s10 }
  0x1a   :  { %p1160_p9 = scmp.lt.u32.totalorder %s1156_s13, %s1561_s1 }
  0x1c   :  { %p1162_p10 = pnand %p1160_p9, %p1157_p8 }
  0x1e   :  { %1165 = shalt.err (!%p1162_p10)
}
  0x1f   :  { %s1166_s18 = scalar_lea.vmem %s33_s10, 4096  ;;  %p1171_p12 = scmp.lt.s32.totalorder %s33_s10, %s33_s10 }
  0x20   :  { %p1167_p11 = scmp.ne.s32.totalorder %s33_s10, %s1166_s18  ;;  %p1172_p13 = scmp.lt.s32.totalorder %s1166_s18, %s1166_s18 }
  0x22   :  { %p1173_p0 = por %p1172_p13, %p1171_p12 }
  0x24   :  { %p1174_p1 = pnand %p1173_p0, %p1167_p11 }
  0x26   :  { %1177 = shalt.err (!%p1174_p1)
}
  0x27   :  { %s1210_s0 = smov 256   ;;  %s1211_s19 = smov 16  }
  0x28   :  { %38 = dma.hbm_to_vmem [thread:$0]  %s1561_s1, 4096, %s33_s10, [#allocation7], %s1210_s0, %s1210_s0, %s1211_s19  }
  0x29   :  { %1200 = dma.done.wait [#allocation4], 2048  }
  0x2a   :  { %1201 = vsyncadd [#allocation4], 4294965248 }
  0x2b   :  { %1202 = dma.done.wait [#allocation7], 4096  }
  0x2c   :  { %1203 = vsyncadd [#allocation7], 4294963200  ;;  %v1212_v1 = vmov 0   ;;  %v1022_v2 = vld [vmem:[#allocation6 + $0x4] ss:$16 sps:$4 sm:$0xff]   ;;  %v56_v35 = vld [vmem:[#allocation3 + $0x8] sm:$0xff]  ;;  %v542_v60 = vlaneseq }
  0x2d   :  { %303 = vmatprep.mubr.bf16.mxu0 %v1212_v1  ;;  %416 = vmatprep.mubr.bf16.mxu1 %v1212_v1  ;;  %v1024_v3 = vld [vmem:[#allocation6 + $0xc] ss:$16 sps:$4 sm:$0xff]   ;;  %v1026_v4 = vld [vmem:[#allocation6] ss:$16 sps:$4 sm:$0xff]   ;;  %v1027_v5 = vld [vmem:[#allocation6 + $0x8] ss:$16 sps:$4 sm:$0xff]  }
  0x2e   :  { %1021 = vset.pattern.permute.xlu0 %v1212_v1  ;;  %271 = vmatprep.subr.bf16.mxu0 %v1022_v2  ;;  %v1028_v6 = vld [vmem:[#allocation6 + $0x24] ss:$16 sps:$4 sm:$0xff]   ;;  %v1030_v7 = vld [vmem:[#allocation6 + $0x2c] ss:$16 sps:$4 sm:$0xff]   ;;  %v1032_v8 = vld [vmem:[#allocation6 + $0x20] ss:$16 sps:$4 sm:$0xff]  }
  0x2f   :  { %384 = vmatprep.subr.bf16.mxu1 %v1024_v3  ;;  %272 = vmatpush1.bf16.msra.mxu0 %v1026_v4  ;;  %v1033_v9 = vld [vmem:[#allocation6 + $0x28] ss:$16 sps:$4 sm:$0xff]   ;;  %v1034_v10 = vld [vmem:[#allocation6 + $0x44] ss:$16 sps:$4 sm:$0xff]   ;;  %v1036_v11 = vld [vmem:[#allocation6 + $0x4c] ss:$16 sps:$4 sm:$0xff]  }
  0x30   :  { %385 = vmatpush1.bf16.msra.mxu1 %v1027_v5  ;;  %273 = vmatprep.subr.bf16.mxu0 %v1028_v6  ;;  %v1038_v12 = vld [vmem:[#allocation6 + $0x40] ss:$16 sps:$4 sm:$0xff]   ;;  %v1039_v13 = vld [vmem:[#allocation6 + $0x48] ss:$16 sps:$4 sm:$0xff]   ;;  %v1040_v14 = vld [vmem:[#allocation6 + $0x64] ss:$16 sps:$4 sm:$0xff]  }
  0x31   :  { %386 = vmatprep.subr.bf16.mxu1 %v1030_v7  ;;  %v1042_v15 = vld [vmem:[#allocation6 + $0x6c] ss:$16 sps:$4 sm:$0xff]   ;;  %v1044_v16 = vld [vmem:[#allocation6 + $0x60] ss:$16 sps:$4 sm:$0xff]   ;;  %v1045_v17 = vld [vmem:[#allocation6 + $0x68] ss:$16 sps:$4 sm:$0xff]  }
  0x32   :  { %v1046_v18 = vld [vmem:[#allocation6 + $0x84] ss:$16 sps:$4 sm:$0xff]   ;;  %v1048_v19 = vld [vmem:[#allocation6 + $0x8c] ss:$16 sps:$4 sm:$0xff]   ;;  %v1050_v20 = vld [vmem:[#allocation6 + $0x80] ss:$16 sps:$4 sm:$0xff]  }
  0x33   :  { %274 = vmatpush1.bf16.msra.mxu0 %v1032_v8  ;;  %v1051_v21 = vld [vmem:[#allocation6 + $0x88] ss:$16 sps:$4 sm:$0xff]   ;;  %v1052_v22 = vld [vmem:[#allocation6 + $0xa4] ss:$16 sps:$4 sm:$0xff]   ;;  %v1054_v23 = vld [vmem:[#allocation6 + $0xac] ss:$16 sps:$4 sm:$0xff]  }
  0x34   :  { %387 = vmatpush1.bf16.msra.mxu1 %v1033_v9  ;;  %275 = vmatprep.subr.bf16.mxu0 %v1034_v10  ;;  %v1056_v24 = vld [vmem:[#allocation6 + $0xa0] ss:$16 sps:$4 sm:$0xff]   ;;  %v1057_v25 = vld [vmem:[#allocation6 + $0xa8] ss:$16 sps:$4 sm:$0xff]   ;;  %v1058_v26 = vld [vmem:[#allocation6 + $0xc4] ss:$16 sps:$4 sm:$0xff]  }
  0x35   :  { %388 = vmatprep.subr.bf16.mxu1 %v1036_v11  ;;  %v1060_v27 = vld [vmem:[#allocation6 + $0xcc] ss:$16 sps:$4 sm:$0xff]   ;;  %v1062_v28 = vld [vmem:[#allocation6 + $0xc0] ss:$16 sps:$4 sm:$0xff]   ;;  %v1063_v29 = vld [vmem:[#allocation6 + $0xc8] ss:$16 sps:$4 sm:$0xff]  }
  0x36   :  { %v1064_v30 = vld [vmem:[#allocation6 + $0xe4] ss:$16 sps:$4 sm:$0xff]   ;;  %v1066_v31 = vld [vmem:[#allocation6 + $0xec] ss:$16 sps:$4 sm:$0xff]   ;;  %v1068_v32 = vld [vmem:[#allocation6 + $0xe0] ss:$16 sps:$4 sm:$0xff]  }
  0x37   :  { %276 = vmatpush1.bf16.msra.mxu0 %v1038_v12  ;;  %v1069_v33 = vld [vmem:[#allocation6 + $0xe8] ss:$16 sps:$4 sm:$0xff]   ;;  %v55_v34 = vld [vmem:[#allocation3] sm:$0xff]  ;;  %v57_v37 = vld [vmem:[#allocation3 + $0x10] sm:$0xff]  ;;  %v1213_v58 = vmov 1966171168  }
  0x38   :  { %389 = vmatpush1.bf16.msra.mxu1 %v1039_v13  ;;  %277 = vmatprep.subr.bf16.mxu0 %v1040_v14  ;;  %v71_v36 = vpack.c.bf16 %v56_v35, %v55_v34  ;;  %v58_v38 = vld [vmem:[#allocation3 + $0x18] sm:$0xff]  ;;  %v59_v40 = vld [vmem:[#allocation3 + $0x20] sm:$0xff]  ;;  %v60_v41 = vld [vmem:[#allocation3 + $0x28] sm:$0xff]  ;;  %v540_v59 = vunpack.c.l.s4 %v1213_v58  ;;  %v543_v62 = vshrl.u32 %v542_v60, 7 }
  0x39   :  { %390 = vmatprep.subr.bf16.mxu1 %v1042_v15  ;;  %v72_v39 = vpack.c.bf16 %v58_v38, %v57_v37  ;;  %v73_v42 = vpack.c.bf16 %v60_v41, %v59_v40  ;;  %v61_v43 = vld [vmem:[#allocation3 + $0x30] sm:$0xff]  ;;  %v62_v44 = vld [vmem:[#allocation3 + $0x38] sm:$0xff]  ;;  %v63_v46 = vld [vmem:[#allocation3 + $0x40] sm:$0xff] }
  0x3a   :  { %v74_v45 = vpack.c.bf16 %v62_v44, %v61_v43  ;;  %v64_v47 = vld [vmem:[#allocation3 + $0x48] sm:$0xff]  ;;  %v65_v49 = vld [vmem:[#allocation3 + $0x50] sm:$0xff]  ;;  %v66_v50 = vld [vmem:[#allocation3 + $0x58] sm:$0xff]  ;;  %v541_v61 = vunpack.c.0.s8 %v540_v59  ;;  %v1304_v12 = vsub.s32 0, %v543_v62 }
  0x3b   :  { %278 = vmatpush1.bf16.msra.mxu0 %v1044_v16  ;;  %v75_v48 = vpack.c.bf16 %v64_v47, %v63_v46  ;;  %v76_v51 = vpack.c.bf16 %v66_v50, %v65_v49  ;;  %v67_v52 = vld [vmem:[#allocation3 + $0x60] sm:$0xff]  ;;  %v68_v53 = vld [vmem:[#allocation3 + $0x68] sm:$0xff]  ;;  %v69_v55 = vld [vmem:[#allocation3 + $0x70] sm:$0xff] }
  0x3c   :  { %391 = vmatpush1.bf16.msra.mxu1 %v1045_v17  ;;  %279 = vmatprep.subr.bf16.mxu0 %v1046_v18  ;;  %v77_v54 = vpack.c.bf16 %v68_v53, %v67_v52  ;;  %v70_v56 = vld [vmem:[#allocation3 + $0x78] sm:$0xff]  ;;  %v1294_v0 = vsub.s32 %v541_v61, %v543_v62 }
  0x3d   :  { %392 = vmatprep.subr.bf16.mxu1 %v1048_v19  ;;  %v78_v57 = vpack.c.bf16 %v70_v56, %v69_v55  ;;  %v1292_v63 = vld.sshfl [vmem:[%s1563_s3] sm:$0x33 pattern:$0x75316420] }
  0x3e   :  { %v840_v4 = vld [vmem:[#allocation2] sm:$0x1] }
  0x3f   :  { %280 = vmatpush1.bf16.msra.mxu0 %v1050_v20  ;;  %843 = vperm.xlu0 %1021, %v840_v4   ;;  %v1008_v5 = vld.sshfl [vmem:[%s1562_s2] sm:$0x33 pattern:$0x75316420]  ;;  %s1214_s2 = smov [#allocation8]  }
  0x40   :  { %393 = vmatpush1.bf16.msra.mxu1 %v1051_v21  ;;  %281 = vmatprep.subr.bf16.mxu0 %v1052_v22  ;;  %v538_v6 = vcombine.high %v1008_v5, %v1008_v5  ;;  %v545_v7 = vrot.slane %v1008_v5, %v1294_v0  ;;  %s966_s3 = sshll.u32 %s1214_s2, 4  ;;  %s967_s3 = int_to_ptr.vmem [resolvable:$true] %s966_s3 }
  0x41   :  { %394 = vmatprep.subr.bf16.mxu1 %v1054_v23  ;;  %s1178_s25 = scalar_lea.vmem %s967_s3, 16  ;;  %s1182_s26 = scalar_lea.vmem %s967_s3, 32 }
  0x42   :  { %v552_v8 = vrot.slane %v538_v6, %v1294_v0  ;;  %v553_v9 = vcombine.high %v545_v7, %v545_v7  ;;  %v556_v11 = vpack.i.b16 %v545_v7, %v545_v7  ;;  %p1179_p2 = scmp.ne.s32.totalorder %s967_s3, %s1178_s25  ;;  %p1183_p3 = scmp.lt.s32.totalorder %s967_s3, %s967_s3 }
  0x43   :  { %282 = vmatpush1.bf16.msra.mxu0 %v1056_v24  ;;  %p1184_p4 = scmp.lt.s32.totalorder %s1182_s26, %s1178_s25 }
  0x44   :  { %395 = vmatpush1.bf16.msra.mxu1 %v1057_v25  ;;  %283 = vmatprep.subr.bf16.mxu0 %v1058_v26  ;;  %v554_v10 = vcombine.high %v552_v8, %v552_v8  ;;  %v570_v13 = vpack.i.b16 %v553_v9, %v553_v9  ;;  %v563_v14 = vpack.i.b16 %v552_v8, %v552_v8 }
  0x45   :  { %396 = vmatprep.subr.bf16.mxu1 %v1060_v27  ;;  %v1307_v20 = vrot.slane %v556_v11, %v1304_v12  ;;  %p1185_p5 = por %p1184_p4, %p1183_p3 }
  0x46   :  { %v577_v15 = vpack.i.b16 %v554_v10, %v554_v10  ;;  %v1310_v21 = vrot.slane %v570_v13, %v1304_v12  ;;  %v1313_v24 = vrot.slane %v563_v14, %v1304_v12 }
  0x47   :  { %284 = vmatpush1.bf16.msra.mxu0 %v1062_v28  ;;  %p1186_p6 = pnand %p1185_p5, %p1179_p2 }
  0x48   :  { %397 = vmatpush1.bf16.msra.mxu1 %v1063_v29  ;;  %285 = vmatprep.subr.bf16.mxu0 %v1064_v30  ;;  %v1316_v25 = vrot.slane %v577_v15, %v1304_v12 }
  0x49   :  { %398 = vmatprep.subr.bf16.mxu1 %v1066_v31 }
  0x4b   :  { %286 = vmatpush1.bf16.msra.mxu0 %v1068_v32 }
  0x4c   :  { %399 = vmatpush1.bf16.msra.mxu1 %v1069_v33 }
  0x4e   :  { %304 = vmatmul.mubr.bf16.vlgmr.msra.gmra.mrb[0].mxu0 %v71_v36 }
  0x4f   :  { %417 = vmatmul.mubr.bf16.vlgmr.msra.gmra.mrb[0].mxu1 %v71_v36  ;;  %313 = vmatprep.mubr.bf16.mxu0 %v1212_v1 }
  0x50   :  { %426 = vmatprep.mubr.bf16.mxu1 %v1212_v1 }
  0x56   :  { %314 = vmatmul.mubr.bf16.gmra.mrb[4].mxu0 %v72_v39 }
  0x57   :  { %427 = vmatmul.mubr.bf16.gmra.mrb[4].mxu1 %v72_v39  ;;  %323 = vmatprep.mubr.bf16.mxu0 %v1212_v1 }
  0x58   :  { %436 = vmatprep.mubr.bf16.mxu1 %v1212_v1 }
  0x5e   :  { %324 = vmatmul.mubr.bf16.gmra.mrb[8].mxu0 %v73_v42 }
  0x5f   :  { %437 = vmatmul.mubr.bf16.gmra.mrb[8].mxu1 %v73_v42  ;;  %333 = vmatprep.mubr.bf16.mxu0 %v1212_v1 }
  0x60   :  { %446 = vmatprep.mubr.bf16.mxu1 %v1212_v1 }
  0x66   :  { %334 = vmatmul.mubr.bf16.gmra.mrb[12].mxu0 %v74_v45 }
  0x67   :  { %447 = vmatmul.mubr.bf16.gmra.mrb[12].mxu1 %v74_v45  ;;  %343 = vmatprep.mubr.bf16.mxu0 %v1212_v1 }
  0x68   :  { %456 = vmatprep.mubr.bf16.mxu1 %v1212_v1 }
  0x6e   :  { %344 = vmatmul.mubr.bf16.gmra.mrb[16].mxu0 %v75_v48 }
  0x6f   :  { %457 = vmatmul.mubr.bf16.gmra.mrb[16].mxu1 %v75_v48  ;;  %353 = vmatprep.mubr.bf16.mxu0 %v1212_v1 }
  0x70   :  { %466 = vmatprep.mubr.bf16.mxu1 %v1212_v1 }
  0x76   :  { %354 = vmatmul.mubr.bf16.gmra.mrb[20].mxu0 %v76_v51 }
  0x77   :  { %467 = vmatmul.mubr.bf16.gmra.mrb[20].mxu1 %v76_v51  ;;  %363 = vmatprep.mubr.bf16.mxu0 %v1212_v1 }
  0x78   :  { %476 = vmatprep.mubr.bf16.mxu1 %v1212_v1 }
  0x7e   :  { %364 = vmatmul.mubr.bf16.gmra.mrb[24].mxu0 %v77_v54 }
  0x7f   :  { %477 = vmatmul.mubr.bf16.gmra.mrb[24].mxu1 %v77_v54  ;;  %373 = vmatprep.mubr.bf16.mxu0 %v1212_v1 }
  0x80   :  { %486 = vmatprep.mubr.bf16.mxu1 %v1212_v1  ;;  %v858_v1 = vcombine.high %v1292_v63, %v1292_v63 }
  0x82   :  { %v872_v2 = vrot.slane %v858_v1, %v1294_v0 }
  0x84   :  { %v874_v3 = vcombine.high %v872_v2, %v872_v2 }
  0x86   :  { %374 = vmatmul.mubr.bf16.gmra.mrb[28].mxu0 %v78_v57 }
  0x87   :  { %487 = vmatmul.mubr.bf16.gmra.mrb[28].mxu1 %v78_v57  ;;  %951 = vmatprep.mubr.bf16.mxu0 %v874_v3 }
  0x88   :  { %911 = vmatprep.mubr.bf16.mxu1 %v872_v2 }
 0x121   :  { %v305_v16 = vpop.f32.mrb[0].mxu0 }
 0x122   :  { %v418_v17 = vpop.f32.mrb[0].mxu1  ;;  %v307_v18 = vpop.f32.mrb[1].mxu0 }
 0x123   :  { %v420_v19 = vpop.f32.mrb[1].mxu1  ;;  %v309_v22 = vpop.f32.mrb[2].mxu0 }
 0x124   :  { %v422_v23 = vpop.f32.mrb[2].mxu1  ;;  %v497_v26 = vpack.c.bf16 %v309_v22, %v305_v16  ;;  %v311_v28 = vpop.f32.mrb[3].mxu0 }
 0x125   :  { %v499_v27 = vpack.c.bf16 %v422_v23, %v418_v17  ;;  %v424_v29 = vpop.f32.mrb[3].mxu1  ;;  %v498_v30 = vpack.c.bf16 %v311_v28, %v307_v18 }
 0x126   :  { %v500_v31 = vpack.c.bf16 %v424_v29, %v420_v19  ;;  %v1319_v32 = vadd.bf16 %v1307_v20, %v497_v26 }
 0x127   :  { %v1322_v33 = vadd.bf16 %v1310_v21, %v499_v27  ;;  %v1325_v34 = vadd.bf16 %v1313_v24, %v498_v30 }
 0x128   :  { %v1328_v35 = vadd.bf16 %v1316_v25, %v500_v31  ;;  %v615_v36 = vmul.bf16 %v1319_v32, %v1319_v32 }
 0x129   :  { %v617_v37 = vmul.bf16 %v1322_v33, %v1322_v33  ;;  %v616_v38 = vmul.bf16 %v1325_v34, %v1325_v34  ;;  %v315_v40 = vpop.f32.mrb[4].mxu0 }
 0x12a   :  { %v618_v39 = vmul.bf16 %v1328_v35, %v1328_v35  ;;  %v428_v41 = vpop.f32.mrb[4].mxu1  ;;  %v647_v42 = vmul.bf16 1024605458, %v615_v36  ;;  %v317_v44 = vpop.f32.mrb[5].mxu0 }
 0x12b   :  { %v649_v43 = vmul.bf16 1024605458, %v617_v37  ;;  %v430_v45 = vpop.f32.mrb[5].mxu1  ;;  %v648_v46 = vmul.bf16 1024605458, %v616_v38  ;;  %v319_v48 = vpop.f32.mrb[6].mxu0 }
 0x12c   :  { %v650_v47 = vmul.bf16 1024605458, %v618_v39  ;;  %v432_v49 = vpop.f32.mrb[6].mxu1  ;;  %v679_v50 = vadd.bf16 1061961548, %v647_v42  ;;  %v501_v52 = vpack.c.bf16 %v319_v48, %v315_v40  ;;  %v321_v54 = vpop.f32.mrb[7].mxu0 }
 0x12d   :  { %v681_v51 = vadd.bf16 1061961548, %v649_v43  ;;  %v503_v53 = vpack.c.bf16 %v432_v49, %v428_v41  ;;  %v434_v55 = vpop.f32.mrb[7].mxu1  ;;  %v680_v56 = vadd.bf16 1061961548, %v648_v46  ;;  %v502_v58 = vpack.c.bf16 %v321_v54, %v317_v44 }
 0x12e   :  { %v682_v57 = vadd.bf16 1061961548, %v650_v47  ;;  %v504_v59 = vpack.c.bf16 %v434_v55, %v430_v45  ;;  %v711_v60 = vmul.bf16 %v679_v50, %v1319_v32  ;;  %v1341_v62 = vadd.bf16 %v1307_v20, %v501_v52 }
 0x12f   :  { %v713_v61 = vmul.bf16 %v681_v51, %v1322_v33  ;;  %v1344_v1 = vadd.bf16 %v1310_v21, %v503_v53  ;;  %v712_v2 = vmul.bf16 %v680_v56, %v1325_v34  ;;  %v1349_v4 = vadd.bf16 %v1313_v24, %v502_v58 }
 0x130   :  { %v714_v3 = vmul.bf16 %v682_v57, %v1328_v35  ;;  %v1352_v5 = vadd.bf16 %v1316_v25, %v504_v59  ;;  %1070 = vtanh.bf16 %v711_v60  ;;  %v619_v6 = vmul.bf16 %v1341_v62, %v1341_v62 }
 0x131   :  { %v621_v7 = vmul.bf16 %v1344_v1, %v1344_v1  ;;  %1072 = vtanh.bf16 %v713_v61  ;;  %v620_v8 = vmul.bf16 %v1349_v4, %v1349_v4  ;;  %v325_v10 = vpop.f32.mrb[8].mxu0 }
 0x132   :  { %v622_v9 = vmul.bf16 %v1352_v5, %v1352_v5  ;;  %v438_v11 = vpop.f32.mrb[8].mxu1  ;;  %1074 = vtanh.bf16 %v712_v2  ;;  %v651_v13 = vmul.bf16 1024605458, %v619_v6  ;;  %v327_v15 = vpop.f32.mrb[9].mxu0 }
 0x133   :  { %v653_v14 = vmul.bf16 1024605458, %v621_v7  ;;  %v440_v16 = vpop.f32.mrb[9].mxu1  ;;  %1076 = vtanh.bf16 %v714_v3  ;;  %v652_v17 = vmul.bf16 1024605458, %v620_v8  ;;  %v329_v19 = vpop.f32.mrb[10].mxu0 }
 0x134   :  { %v654_v18 = vmul.bf16 1024605458, %v622_v9  ;;  %v442_v22 = vpop.f32.mrb[10].mxu1  ;;  %v683_v23 = vadd.bf16 1061961548, %v651_v13  ;;  %v505_v27 = vpack.c.bf16 %v329_v19, %v325_v10  ;;  %v331_v29 = vpop.f32.mrb[11].mxu0 }
 0x135   :  { %v685_v26 = vadd.bf16 1061961548, %v653_v14  ;;  %v507_v28 = vpack.c.bf16 %v442_v22, %v438_v11  ;;  %v444_v30 = vpop.f32.mrb[11].mxu1  ;;  %v684_v31 = vadd.bf16 1061961548, %v652_v17  ;;  %v506_v37 = vpack.c.bf16 %v331_v29, %v327_v15 }
 0x136   :  { %v686_v36 = vadd.bf16 1061961548, %v654_v18  ;;  %v508_v38 = vpack.c.bf16 %v444_v30, %v440_v16  ;;  %v715_v39 = vmul.bf16 %v683_v23, %v1341_v62  ;;  %v1365_v41 = vadd.bf16 %v1307_v20, %v505_v27 }
 0x137   :  { %v717_v40 = vmul.bf16 %v685_v26, %v1344_v1  ;;  %v1368_v42 = vadd.bf16 %v1310_v21, %v507_v28  ;;  %v1371_v43 = vadd.bf16 %v1313_v24, %v506_v37  ;;  %v716_v45 = vmul.bf16 %v684_v31, %v1349_v4 }
 0x138   :  { %v1374_v44 = vadd.bf16 %v1316_v25, %v508_v38  ;;  %1078 = vtanh.bf16 %v715_v39  ;;  %v623_v46 = vmul.bf16 %v1365_v41, %v1365_v41  ;;  %v718_v48 = vmul.bf16 %v686_v36, %v1352_v5 }
 0x139   :  { %v625_v47 = vmul.bf16 %v1368_v42, %v1368_v42  ;;  %1080 = vtanh.bf16 %v717_v40  ;;  %v624_v49 = vmul.bf16 %v1371_v43, %v1371_v43  ;;  %v335_v51 = vpop.f32.mrb[12].mxu0 }
 0x13a   :  { %v626_v50 = vmul.bf16 %v1374_v44, %v1374_v44  ;;  %v448_v52 = vpop.f32.mrb[12].mxu1  ;;  %v655_v53 = vmul.bf16 1024605458, %v623_v46  ;;  %v337_v55 = vpop.f32.mrb[13].mxu0  ;;  %1082 = vtanh.bf16 %v716_v45 }
 0x13b   :  { %v657_v54 = vmul.bf16 1024605458, %v625_v47  ;;  %v450_v56 = vpop.f32.mrb[13].mxu1  ;;  %v1071_v57 = vpop.eup %1070  ;;  %v656_v58 = vmul.bf16 1024605458, %v624_v49  ;;  %1084 = vtanh.bf16 %v718_v48 }
 0x13c   :  { %v658_v59 = vmul.bf16 1024605458, %v626_v50  ;;  %v339_v60 = vpop.f32.mrb[14].mxu0  ;;  %v452_v61 = vpop.f32.mrb[14].mxu1  ;;  %v687_v3 = vadd.bf16 1061961548, %v655_v53 }
 0x13d   :  { %v1073_v2 = vpop.eup %1072  ;;  %v689_v6 = vadd.bf16 1061961548, %v657_v54  ;;  %v509_v7 = vpack.c.bf16 %v339_v60, %v335_v51  ;;  %v688_v9 = vadd.bf16 1061961548, %v656_v58  ;;  %v511_v11 = vpack.c.bf16 %v452_v61, %v448_v52  ;;  %v341_v18 = vpop.f32.mrb[15].mxu0 }
 0x13e   :  { %v1075_v8 = vpop.eup %1074  ;;  %v690_v10 = vadd.bf16 1061961548, %v658_v59  ;;  %v775_v14 = vadd.bf16 1065369472, %v1071_v57  ;;  %v719_v15 = vmul.bf16 %v687_v3, %v1365_v41  ;;  %v454_v19 = vpop.f32.mrb[15].mxu1  ;;  %v510_v29 = vpack.c.bf16 %v341_v18, %v337_v55 }
 0x13f   :  { %v1077_v13 = vpop.eup %1076  ;;  %v721_v16 = vmul.bf16 %v689_v6, %v1368_v42  ;;  %v1389_v17 = vadd.bf16 %v1307_v20, %v509_v7  ;;  %v777_v22 = vadd.bf16 1065369472, %v1073_v2  ;;  %v720_v23 = vmul.bf16 %v688_v9, %v1371_v43 }
 0x140   :  { %v722_v26 = vmul.bf16 %v690_v10, %v1374_v44  ;;  %v1394_v27 = vadd.bf16 %v1310_v21, %v511_v11  ;;  %1086 = vtanh.bf16 %v719_v15  ;;  %v512_v30 = vpack.c.bf16 %v454_v19, %v450_v56 }
 0x141   :  { %v627_v28 = vmul.bf16 %v1389_v17, %v1389_v17  ;;  %1088 = vtanh.bf16 %v721_v16  ;;  %v345_v36 = vpop.f32.mrb[16].mxu0  ;;  %v776_v38 = vadd.bf16 1065369472, %v1075_v8  ;;  %v778_v39 = vadd.bf16 1065369472, %v1077_v13 }
 0x142   :  { %v629_v31 = vmul.bf16 %v1394_v27, %v1394_v27  ;;  %v458_v37 = vpop.f32.mrb[16].mxu1  ;;  %v807_v40 = vmul.bf16 %v775_v14, %v1319_v32  ;;  %v1402_v46 = vadd.bf16 %v1313_v24, %v510_v29  ;;  %v1405_v47 = vadd.bf16 %v1316_v25, %v512_v30  ;;  %v347_v48 = vpop.f32.mrb[17].mxu0 }
 0x143   :  { %v659_v45 = vmul.bf16 1024605458, %v627_v28  ;;  %v460_v49 = vpop.f32.mrb[17].mxu1  ;;  %v1079_v50 = vpop.eup %1078  ;;  %1090 = vtanh.bf16 %v720_v23  ;;  %v808_v52 = vmul.bf16 %v776_v38, %v1325_v34  ;;  %v810_v53 = vmul.bf16 %v778_v39, %v1328_v35 }
 0x144   :  { %v661_v51 = vmul.bf16 1024605458, %v629_v31  ;;  %v349_v54 = vpop.f32.mrb[18].mxu0  ;;  %v462_v55 = vpop.f32.mrb[18].mxu1  ;;  %v809_v32 = vmul.bf16 %v777_v22, %v1322_v33  ;;  %v628_v58 = vmul.bf16 %v1402_v46, %v1402_v46  ;;  %v630_v59 = vmul.bf16 %v1405_v47, %v1405_v47 }
 0x145   :  { %v1081_v56 = vpop.eup %1080  ;;  %v691_v57 = vadd.bf16 1061961548, %v659_v45  ;;  %v351_v60 = vpop.f32.mrb[19].mxu0  ;;  %1092 = vtanh.bf16 %v722_v26  ;;  %879 = vmatprep.subr.bf16.mxu1 %v808_v52  ;;  %919 = vmatprep.subr.bf16.mxu0 %v810_v53  ;;  %v513_v34 = vpack.c.bf16 %v349_v54, %v345_v36  ;;  %v515_v35 = vpack.c.bf16 %v462_v55, %v458_v37 }
 0x146   :  { %v464_v61 = vpop.f32.mrb[19].mxu1  ;;  %v693_v2 = vadd.bf16 1061961548, %v661_v51  ;;  %v779_v3 = vadd.bf16 1065369472, %v1079_v50  ;;  %880 = vmatpush1.bf16.xpose.msra.mxu1 %v807_v40  ;;  %920 = vmatpush1.bf16.xpose.msra.mxu0 %v809_v32  ;;  %v1083_v8 = vpop.eup %1082  ;;  %v514_v18 = vpack.c.bf16 %v351_v60, %v347_v48 }
 0x147   :  { %v723_v6 = vmul.bf16 %v691_v57, %v1389_v17  ;;  %v660_v7 = vmul.bf16 1024605458, %v628_v58  ;;  %v662_v33 = vmul.bf16 1024605458, %v630_v59  ;;  %v781_v9 = vadd.bf16 1065369472, %v1081_v56  ;;  %v1085_v14 = vpop.eup %1084 }
 0x148   :  { %v725_v10 = vmul.bf16 %v693_v2, %v1394_v27  ;;  %v1417_v11 = vadd.bf16 %v1307_v20, %v513_v34  ;;  %v1420_v13 = vadd.bf16 %v1310_v21, %v515_v35  ;;  %v516_v23 = vpack.c.bf16 %v464_v61, %v460_v49 }
 0x149   :  { %1094 = vtanh.bf16 %v723_v6  ;;  %v692_v15 = vadd.bf16 1061961548, %v660_v7  ;;  %v694_v16 = vadd.bf16 1061961548, %v662_v33  ;;  %v355_v26 = vpop.f32.mrb[20].mxu0  ;;  %v1429_v31 = vadd.bf16 %v1313_v24, %v514_v18 }
 0x14a   :  { %1096 = vtanh.bf16 %v725_v10  ;;  %v631_v19 = vmul.bf16 %v1417_v11, %v1417_v11  ;;  %v633_v22 = vmul.bf16 %v1420_v13, %v1420_v13  ;;  %v468_v28 = vpop.f32.mrb[20].mxu1  ;;  %v780_v36 = vadd.bf16 1065369472, %v1083_v8  ;;  %v357_v37 = vpop.f32.mrb[21].mxu0 }
 0x14b   :  { %v724_v29 = vmul.bf16 %v692_v15, %v1402_v46  ;;  %v726_v30 = vmul.bf16 %v694_v16, %v1405_v47  ;;  %v470_v38 = vpop.f32.mrb[21].mxu1  ;;  %v1087_v39 = vpop.eup %1086  ;;  %v1432_v48 = vadd.bf16 %v1316_v25, %v516_v23  ;;  %v782_v50 = vadd.bf16 1065369472, %v1085_v14 }
 0x14c   :  { %v663_v40 = vmul.bf16 1024605458, %v631_v19  ;;  %v665_v45 = vmul.bf16 1024605458, %v633_v22  ;;  %v1089_v49 = vpop.eup %1088  ;;  %v811_v51 = vmul.bf16 %v779_v3, %v1341_v62  ;;  %v632_v52 = vmul.bf16 %v1429_v31, %v1429_v31  ;;  %v359_v54 = vpop.f32.mrb[22].mxu0 }
 0x14d   :  { %v812_v53 = vmul.bf16 %v780_v36, %v1349_v4  ;;  %v472_v55 = vpop.f32.mrb[22].mxu1  ;;  %v813_v56 = vmul.bf16 %v781_v9, %v1344_v1  ;;  %v783_v32 = vadd.bf16 1065369472, %v1087_v39  ;;  %1098 = vtanh.bf16 %v724_v29  ;;  %v361_v2 = vpop.f32.mrb[23].mxu0 }
 0x14e   :  { %v695_v57 = vadd.bf16 1061961548, %v663_v40  ;;  %v1091_v58 = vpop.eup %1090  ;;  %v697_v59 = vadd.bf16 1061961548, %v665_v45  ;;  %v664_v60 = vmul.bf16 1024605458, %v632_v52  ;;  %v634_v61 = vmul.bf16 %v1432_v48, %v1432_v48 }
 0x14f   :  { %881 = vmatprep.subr.bf16.mxu1 %v812_v53  ;;  %v814_v62 = vmul.bf16 %v782_v50, %v1352_v5  ;;  %v474_v34 = vpop.f32.mrb[23].mxu1  ;;  %v785_v35 = vadd.bf16 1065369472, %v1089_v49  ;;  %1100 = vtanh.bf16 %v726_v30  ;;  %v517_v1 = vpack.c.bf16 %v359_v54, %v355_v26 }
 0x150   :  { %v727_v4 = vmul.bf16 %v695_v57, %v1417_v11  ;;  %882 = vmatpush1.bf16.xpose.msra.mxu1 %v811_v51  ;;  %v1093_v3 = vpop.eup %1092  ;;  %v696_v6 = vadd.bf16 1061961548, %v664_v60  ;;  %v666_v7 = vmul.bf16 1024605458, %v634_v61  ;;  %v519_v33 = vpack.c.bf16 %v472_v55, %v468_v28 }
 0x151   :  { %921 = vmatprep.subr.bf16.mxu0 %v814_v62  ;;  %v518_v8 = vpack.c.bf16 %v361_v2, %v357_v37  ;;  %v815_v9 = vmul.bf16 %v783_v32, %v1365_v41  ;;  %v1445_v10 = vadd.bf16 %v1307_v20, %v517_v1  ;;  %v520_v5 = vpack.c.bf16 %v474_v34, %v470_v38  ;;  %v365_v14 = vpop.f32.mrb[24].mxu0 }
 0x152   :  { %922 = vmatpush1.bf16.xpose.msra.mxu0 %v813_v56  ;;  %v478_v15 = vpop.f32.mrb[24].mxu1  ;;  %v784_v16 = vadd.bf16 1065369472, %v1091_v58  ;;  %v729_v18 = vmul.bf16 %v697_v59, %v1420_v13  ;;  %v728_v19 = vmul.bf16 %v696_v6, %v1429_v31  ;;  %v698_v22 = vadd.bf16 1061961548, %v666_v7  ;;  %v367_v26 = vpop.f32.mrb[25].mxu0 }
 0x153   :  { %v1450_v23 = vadd.bf16 %v1310_v21, %v519_v33  ;;  %v480_v28 = vpop.f32.mrb[25].mxu1  ;;  %v635_v41 = vmul.bf16 %v1445_v10, %v1445_v10  ;;  %v1457_v30 = vadd.bf16 %v1313_v24, %v518_v8  ;;  %v1460_v36 = vadd.bf16 %v1316_v25, %v520_v5  ;;  %v369_v38 = vpop.f32.mrb[26].mxu0 }
 0x154   :  { %v1452_v29 = vpop.eup %1094  ;;  %v816_v37 = vmul.bf16 %v784_v16, %v1371_v43  ;;  %v482_v39 = vpop.f32.mrb[26].mxu1  ;;  %v817_v45 = vmul.bf16 %v785_v35, %v1368_v42  ;;  %1102 = vtanh.bf16 %v727_v4  ;;  %v730_v42 = vmul.bf16 %v698_v22, %v1432_v48 }
 0x155   :  { %v1097_v40 = vpop.eup %1096  ;;  %v787_v50 = vadd.bf16 1065369472, %v1452_v29  ;;  %v637_v49 = vmul.bf16 %v1450_v23, %v1450_v23  ;;  %v371_v51 = vpop.f32.mrb[27].mxu0  ;;  %1104 = vtanh.bf16 %v728_v19  ;;  %v667_v53 = vmul.bf16 1024605458, %v635_v41 }
 0x156   :  { %v484_v52 = vpop.f32.mrb[27].mxu1  ;;  %v636_v54 = vmul.bf16 %v1457_v30, %v1457_v30  ;;  %v638_v43 = vmul.bf16 %v1460_v36, %v1460_v36  ;;  %883 = vmatprep.subr.bf16.mxu1 %v816_v37  ;;  %v789_v55 = vadd.bf16 1065369472, %v1097_v40  ;;  %v786_v32 = vadd.bf16 1065369472, %v1093_v3 }
 0x157   :  { %v669_v56 = vmul.bf16 1024605458, %v637_v49  ;;  %1106 = vtanh.bf16 %v729_v18  ;;  %v699_v57 = vadd.bf16 1061961548, %v667_v53  ;;  %v521_v2 = vpack.c.bf16 %v369_v38, %v365_v14 }
 0x158   :  { %v668_v58 = vmul.bf16 1024605458, %v636_v54  ;;  %v670_v59 = vmul.bf16 1024605458, %v638_v43  ;;  %884 = vmatpush1.bf16.xpose.msra.mxu1 %v815_v9  ;;  %v1099_v60 = vpop.eup %1098  ;;  %v818_v62 = vmul.bf16 %v786_v32, %v1374_v44  ;;  %v523_v34 = vpack.c.bf16 %v482_v39, %v478_v15 }
 0x159   :  { %v701_v61 = vadd.bf16 1061961548, %v669_v56  ;;  %v731_v35 = vmul.bf16 %v699_v57, %v1445_v10  ;;  %v522_v6 = vpack.c.bf16 %v371_v51, %v367_v26  ;;  %v375_v7 = vpop.f32.mrb[28].mxu0  ;;  %1108 = vtanh.bf16 %v730_v42 }
 0x15a   :  { %v700_v4 = vadd.bf16 1061961548, %v668_v58  ;;  %v702_v1 = vadd.bf16 1061961548, %v670_v59  ;;  %v488_v33 = vpop.f32.mrb[28].mxu1  ;;  %v1101_v8 = vpop.eup %1100  ;;  %923 = vmatprep.subr.bf16.mxu0 %v818_v62  ;;  %v1475_v3 = vadd.bf16 %v1307_v20, %v521_v2  ;;  %v1478_v9 = vadd.bf16 %v1310_v21, %v523_v34 }
 0x15b   :  { %v524_v5 = vpack.c.bf16 %v484_v52, %v480_v28  ;;  %v377_v44 = vpop.f32.mrb[29].mxu0  ;;  %v490_v14 = vpop.f32.mrb[29].mxu1  ;;  %v733_v15 = vmul.bf16 %v701_v61, %v1450_v23  ;;  %924 = vmatpush1.bf16.xpose.msra.mxu0 %v817_v45  ;;  %v1484_v19 = vadd.bf16 %v1313_v24, %v522_v6  ;;  %1110 = vtanh.bf16 %v731_v35 }
 0x15c   :  { %v732_v16 = vmul.bf16 %v700_v4, %v1457_v30  ;;  %v734_v18 = vmul.bf16 %v702_v1, %v1460_v36  ;;  %v379_v22 = vpop.f32.mrb[30].mxu0  ;;  %v492_v26 = vpop.f32.mrb[30].mxu1  ;;  %v639_v29 = vmul.bf16 %v1475_v3, %v1475_v3  ;;  %v641_v28 = vmul.bf16 %v1478_v9, %v1478_v9 }
 0x15d   :  { %v1491_v41 = vadd.bf16 %v1316_v25, %v524_v5  ;;  %v381_v37 = vpop.f32.mrb[31].mxu0  ;;  %v494_v38 = vpop.f32.mrb[31].mxu1  ;;  %v640_v39 = vmul.bf16 %v1484_v19, %v1484_v19  ;;  %v788_v40 = vadd.bf16 1065369472, %v1099_v60  ;;  %v819_v45 = vmul.bf16 %v787_v50, %v1389_v17 }
 0x15e   :  { %1112 = vtanh.bf16 %v732_v16  ;;  %v671_v49 = vmul.bf16 1024605458, %v639_v29  ;;  %v673_v51 = vmul.bf16 1024605458, %v641_v28  ;;  %v821_v53 = vmul.bf16 %v789_v55, %v1394_v27 }
 0x15f   :  { %1114 = vtanh.bf16 %v734_v18  ;;  %v1103_v52 = vpop.eup %1102  ;;  %v672_v54 = vmul.bf16 1024605458, %v640_v39  ;;  %v642_v43 = vmul.bf16 %v1491_v41, %v1491_v41  ;;  %v820_v42 = vmul.bf16 %v788_v40, %v1402_v46 }
 0x160   :  { %v1105_v56 = vpop.eup %1104  ;;  %1116 = vtanh.bf16 %v733_v15  ;;  %v703_v32 = vadd.bf16 1061961548, %v671_v49  ;;  %v705_v57 = vadd.bf16 1061961548, %v673_v51  ;;  %v790_v58 = vadd.bf16 1065369472, %v1101_v8 }
 0x161   :  { %v704_v59 = vadd.bf16 1061961548, %v672_v54  ;;  %v674_v60 = vmul.bf16 1024605458, %v642_v43  ;;  %885 = vmatprep.subr.bf16.mxu1 %v820_v42  ;;  %v525_v17 = vpack.c.bf16 %v379_v22, %v375_v7  ;;  %v527_v50 = vpack.c.bf16 %v492_v26, %v488_v33 }
 0x162   :  { %v1107_v61 = vpop.eup %1106  ;;  %v791_v62 = vadd.bf16 1065369472, %v1103_v52  ;;  %v735_v27 = vmul.bf16 %v703_v32, %v1475_v3  ;;  %v822_v55 = vmul.bf16 %v790_v58, %v1405_v47  ;;  %886 = vmatpush1.bf16.xpose.msra.mxu1 %v819_v45  ;;  %v526_v2 = vpack.c.bf16 %v381_v37, %v377_v44 }
 0x163   :  { %v736_v46 = vmul.bf16 %v704_v59, %v1484_v19  ;;  %v706_v34 = vadd.bf16 1061961548, %v674_v60  ;;  %v1504_v35 = vadd.bf16 %v1307_v20, %v525_v17  ;;  %v1507_v4 = vadd.bf16 %v1310_v21, %v527_v50 }
 0x164   :  { %v737_v1 = vmul.bf16 %v705_v57, %v1478_v9  ;;  %925 = vmatprep.subr.bf16.mxu0 %v822_v55  ;;  %v1511_v6 = vadd.bf16 %v1313_v24, %v526_v2  ;;  %v528_v7 = vpack.c.bf16 %v494_v38, %v490_v14  ;;  %v792_v33 = vadd.bf16 1065369472, %v1105_v56  ;;  %v1109_v47 = vpop.eup %1108 }
 0x165   :  { %1118 = vtanh.bf16 %v735_v27  ;;  %v738_v8 = vmul.bf16 %v706_v34, %v1491_v41  ;;  %926 = vmatpush1.bf16.xpose.msra.mxu0 %v821_v53  ;;  %v643_v20 = vmul.bf16 %v1504_v35, %v1504_v35  ;;  %v645_v21 = vmul.bf16 %v1507_v4, %v1507_v4 }
 0x166   :  { %1120 = vtanh.bf16 %v736_v46  ;;  %v644_v5 = vmul.bf16 %v1511_v6, %v1511_v6  ;;  %v1521_v24 = vadd.bf16 %v1316_v25, %v528_v7  ;;  %v824_v44 = vmul.bf16 %v792_v33, %v1429_v31  ;;  %v1111_v14 = vpop.eup %1110 }
 0x167   :  { %v793_v15 = vadd.bf16 1065369472, %v1107_v61  ;;  %1122 = vtanh.bf16 %v738_v8  ;;  %v675_v16 = vmul.bf16 1024605458, %v643_v20  ;;  %v677_v18 = vmul.bf16 1024605458, %v645_v21 }
 0x168   :  { %v823_v26 = vmul.bf16 %v791_v62, %v1417_v11  ;;  %v676_v29 = vmul.bf16 1024605458, %v644_v5  ;;  %v646_v28 = vmul.bf16 %v1521_v24, %v1521_v24  ;;  %887 = vmatprep.subr.bf16.mxu1 %v824_v44  ;;  %v794_v37 = vadd.bf16 1065369472, %v1109_v47  ;;  %v844_v44 = vpop.permute.xlu0 %843 }
 0x169   :  { %v1113_v22 = vpop.eup %1112  ;;  %1124 = vtanh.bf16 %v737_v1  ;;  %v707_v25 = vadd.bf16 1061961548, %v675_v16  ;;  %v709_v39 = vadd.bf16 1061961548, %v677_v18  ;;  %v825_v52 = vmul.bf16 %v793_v15, %v1420_v13 }
 0x16a   :  { %v1115_v38 = vpop.eup %1114  ;;  %v796_v40 = vadd.bf16 1065369472, %v1113_v22  ;;  %v708_v31 = vadd.bf16 1061961548, %v676_v29  ;;  %v678_v45 = vmul.bf16 1024605458, %v646_v28  ;;  %v826_v49 = vmul.bf16 %v794_v37, %v1432_v48  ;;  %888 = vmatpush1.bf16.xpose.msra.mxu1 %v823_v26 }
 0x16b   :  { %v1117_v51 = vpop.eup %1116  ;;  %v739_v11 = vmul.bf16 %v707_v25, %v1504_v35  ;;  %v798_v54 = vadd.bf16 1065369472, %v1115_v38  ;;  %v795_v43 = vadd.bf16 1065369472, %v1111_v14  ;;  %v741_v32 = vmul.bf16 %v709_v39, %v1507_v4 }
 0x16c   :  { %v828_v53 = vmul.bf16 %v796_v40, %v1457_v30  ;;  %v740_v42 = vmul.bf16 %v708_v31, %v1511_v6  ;;  %v710_v56 = vadd.bf16 1061961548, %v678_v45  ;;  %927 = vmatprep.subr.bf16.mxu0 %v826_v49  ;;  %v797_v13 = vadd.bf16 1065369472, %v1117_v51 }
 0x16d   :  { %928 = vmatpush1.bf16.xpose.msra.mxu0 %v825_v52  ;;  %v830_v48 = vmul.bf16 %v798_v54, %v1460_v36  ;;  %1126 = vtanh.bf16 %v739_v11  ;;  %v827_v30 = vmul.bf16 %v795_v43, %v1445_v10 }
 0x16e   :  { %889 = vmatprep.subr.bf16.mxu1 %v828_v53  ;;  %v742_v57 = vmul.bf16 %v710_v56, %v1521_v24  ;;  %1128 = vtanh.bf16 %v740_v42  ;;  %v829_v50 = vmul.bf16 %v797_v13, %v1450_v23 }
 0x16f   :  { %929 = vmatprep.subr.bf16.mxu0 %v830_v48 }
 0x170   :  { %v1119_v58 = vpop.eup %1118  ;;  %1130 = vtanh.bf16 %v742_v57 }
 0x171   :  { %v1121_v59 = vpop.eup %1120  ;;  %1132 = vtanh.bf16 %v741_v32  ;;  %v799_v36 = vadd.bf16 1065369472, %v1119_v58 }
 0x172   :  { %v1123_v60 = vpop.eup %1122  ;;  %890 = vmatpush1.bf16.xpose.msra.mxu1 %v827_v30  ;;  %v800_v17 = vadd.bf16 1065369472, %v1121_v59 }
 0x173   :  { %v802_v61 = vadd.bf16 1065369472, %v1123_v60  ;;  %v831_v10 = vmul.bf16 %v799_v36, %v1475_v3 }
 0x174   :  { %v1125_v62 = vpop.eup %1124  ;;  %v832_v27 = vmul.bf16 %v800_v17, %v1484_v19 }
 0x175   :  { %930 = vmatpush1.bf16.xpose.msra.mxu0 %v829_v50  ;;  %v834_v55 = vmul.bf16 %v802_v61, %v1491_v41  ;;  %v801_v2 = vadd.bf16 1065369472, %v1125_v62 }
 0x176   :  { %891 = vmatprep.subr.bf16.mxu1 %v832_v27 }
 0x177   :  { %931 = vmatprep.subr.bf16.mxu0 %v834_v55  ;;  %v833_v7 = vmul.bf16 %v801_v2, %v1478_v9  ;;  %v865_v9 = vrot.slane %v1292_v63, %v1294_v0 }
 0x178   :  { %v1127_v46 = vpop.eup %1126 }
 0x179   :  { %v1129_v34 = vpop.eup %1128  ;;  %v803_v47 = vadd.bf16 1065369472, %v1127_v46  ;;  %v873_v5 = vcombine.high %v865_v9, %v865_v9 }
 0x17a   :  { %892 = vmatpush1.bf16.xpose.msra.mxu1 %v831_v10  ;;  %v804_v23 = vadd.bf16 1065369472, %v1129_v34 }
 0x17b   :  { %v1131_v1 = vpop.eup %1130  ;;  %v835_v21 = vmul.bf16 %v803_v47, %v1504_v35 }
 0x17c   :  { %v1133_v33 = vpop.eup %1132  ;;  %v806_v8 = vadd.bf16 1065369472, %v1131_v1  ;;  %v836_v19 = vmul.bf16 %v804_v23, %v1511_v6  ;;  %v849_v6 = vrot.slane %v844_v44, %v1304_v12 }
 0x17d   :  { %932 = vmatpush1.bf16.xpose.msra.mxu0 %v833_v7  ;;  %v805_v20 = vadd.bf16 1065369472, %v1133_v33 }
 0x17e   :  { %v838_v41 = vmul.bf16 %v806_v8, %v1521_v24  ;;  %893 = vmatprep.subr.bf16.mxu1 %v836_v19 }
 0x17f   :  { %v837_v3 = vmul.bf16 %v805_v20, %v1507_v4 }
 0x180   :  { %933 = vmatprep.subr.bf16.mxu0 %v838_v41 }
 0x182   :  { %894 = vmatpush1.bf16.xpose.msra.mxu1 %v835_v21 }
 0x185   :  { %934 = vmatpush1.bf16.xpose.msra.mxu0 %v837_v3 }
 0x189   :  { %912 = vmatmul.mubr.bf16.vlgmr.msra.gmra.mrb[32].mxu1 %v865_v9 }
 0x18c   :  { %952 = vmatmul.mubr.bf16.vlgmr.msra.gmra.mrb[32].mxu0 %v873_v5 }
 0x25c   :  { %v913_v14 = vpop.f32.mrb[32].mxu1 }
 0x25d   :  { %v914_v24 = vadd.f32 %v913_v14, %v849_v6  ;;  %v915_v15 = vpop.f32.mrb[33].mxu1 }
 0x25e   :  { %v916_v35 = vpop.f32.mrb[34].mxu1 }
 0x25f   :  { %v953_v16 = vpop.f32.mrb[32].mxu0  ;;  %v917_v18 = vpop.f32.mrb[35].mxu1 }
 0x260   :  { %v954_v22 = vadd.f32 %v953_v16, %v914_v24  ;;  %v955_v4 = vpop.f32.mrb[33].mxu0 }
 0x261   :  { %v956_v26 = vpop.f32.mrb[34].mxu0 }
 0x262   :  { %959 = vst [vmem:[#allocation8] sm:$0x1] %v954_v22  ;;  %v957_v63 = vpop.f32.mrb[35].mxu0 }
 0x263   :  { %1189 = shalt.err (!%p1186_p6)
}
 0x264   :  { %s1190_s4 = scalar_lea.hbm %s1565_s5, 16 }
 0x265   :  { %p1191_p7 = scmp.ne.s32.totalorder %s1565_s5, %s1190_s4  ;;  %p1194_p8 = scmp.lt.u32.totalorder %s1190_s4, %s1565_s5 }
 0x267   :  { %p1196_p9 = pnand %p1194_p8, %p1191_p7 }
 0x269   :  { %1199 = shalt.err (!%p1196_p9)
}
 0x26a   :  { %969 = dma.vmem_to_hbm [thread:$0]  %s967_s3, 16, %s1565_s5, [#allocation5]  }
 0x26b   :  { %1204 = dma.done.wait [#allocation5], 16  }
 0x26c   :  { %1205 = vsyncadd [#allocation5], 4294967280 }
 0x26d   :  { %973 = vsyncpa [#allocation4], 1 }
 0x26e   :  { %974 = vsyncpa [#allocation7], 1 }
 0x26f   :  { %975 = vsyncpa [#allocation5], 1 }

</bundles_post_ra>
